<compile_context>
chip_gen: v7x
topology: tpu7x:2x2x1
jax: 0.10.0
libtpu: 0.0.40
codegen_flags: <defaults>
</compile_context>

<pallas_src>
import functools

import jax
import jax.numpy as jnp
from jax.experimental import pallas as pl
from jax.experimental.pallas import tpu as pltpu

LANE = 128        # vreg lane count (last-dim tiling)
SUB = 8           # vreg sublane count (f32 second-to-last-dim tiling)
CHUNK_ROWS = 512  # compute sub-chunk rows: keeps per-iteration f32 temps small


def _sigmoid_tanh(x):
    # sigmoid(x) == 0.5*tanh(0.5*x) + 0.5 : a single EUP push per vreg instead
    # of exp + reciprocal (two) -- halves EUP pressure (matters on v7x).
    return 0.5 * jnp.tanh(0.5 * x) + 0.5


def _partial_sums_jax(x, t):
    """Pure-JAX partial sums for tiny inputs / the <128-element ragged tail."""
    s = _sigmoid_tanh(x.astype(jnp.float32))
    tf = t.astype(jnp.float32)
    return jnp.sum(s * tf), jnp.sum(s), jnp.sum(tf)


def _detect_num_tensorcores():
    """Best-effort TensorCore count one pallas_call can span (1 if unknown)."""
    try:
        info = pltpu.get_tpu_info()
        for name in ("num_cores", "num_tensorcores", "tensor_core_count",
                     "core_count", "cores_per_chip"):
            v = getattr(info, name, None)
            if isinstance(v, int) and v > 0:
                return v
    except Exception:
        pass
    try:
        dev = jax.devices()[0]
        for name in ("num_cores", "core_count"):
            v = getattr(dev, name, None)
            if isinstance(v, int) and v > 0:
                return v
    except Exception:
        pass
    return 1


def _dice_kernel(x_ref, t_ref, out_ref, acc_i, acc_s, acc_t, *,
                 rows, tile_rows, chunk_rows, tiles_per, parallel, ragged):
    """Grid = (num_parallel, tiles_per) if parallel else (tiles_total,).

    Per-core (8,128) VMEM accumulators hold lane-wise partial sums of
    sigmoid(x)*t, sigmoid(x), t. Each tile is walked in chunk_rows sub-chunks
    (pl.loop) so temporaries stay tiny even for multi-MiB DMA tiles. Each core
    writes its (3, 8, 128) partial slab once, on its last reduction step.
    """
    if parallel:
        i = pl.program_id(0)
        k = pl.program_id(1)
        k_last = pl.num_programs(1) - 1
    else:
        i = 0
        k = pl.program_id(0)
        k_last = pl.num_programs(0) - 1

    @pl.when(k == 0)
    def _():
        acc_i[...] = jnp.zeros_like(acc_i)
        acc_s[...] = jnp.zeros_like(acc_s)
        acc_t[...] = jnp.zeros_like(acc_t)

    start_row = (i * tiles_per + k) * tile_rows
    n_chunks = tile_rows // chunk_rows

    def accumulate(s_v, t_v):
        # (chunk_rows,128) -> (chunk_rows//8, 8, 128); reducing the leading
        # axis is pure vreg-wise VPU adds -- no cross-lane (XLU) work here.
        acc_i[...] += jnp.sum((s_v * t_v).reshape(-1, SUB, LANE), axis=0)
        acc_s[...] += jnp.sum(s_v.reshape(-1, SUB, LANE), axis=0)
        acc_t[...] += jnp.sum(t_v.reshape(-1, SUB, LANE), axis=0)

    def load_chunk(c):
        r0 = pl.multiple_of(c * chunk_rows, chunk_rows)
        # Cast on load: HBM may carry bf16 operands; arithmetic stays f32.
        x = x_ref[pl.ds(r0, chunk_rows), :].astype(jnp.float32)
        t = t_ref[pl.ds(r0, chunk_rows), :].astype(jnp.float32)
        return r0, _sigmoid_tanh(x), t

    def run_clean():
        @pl.loop(0, n_chunks)
        def _(c):
            _, s, t = load_chunk(c)
            accumulate(s, t)

    if not ragged:
        # Statically known: every tile is fully in bounds -> no mask at all.
        run_clean()
    else:
        @pl.when(start_row + tile_rows <= rows)      # tile fully in bounds
        def _():
            run_clean()

        @pl.when(start_row + tile_rows > rows)       # ragged edge / overshoot
        def _():
            @pl.loop(0, n_chunks)
            def _(c):
                r0, s, t = load_chunk(c)
                # Row-level mask: int32-safe up to n < 2**38 elements.
                rid = start_row + r0 + jax.lax.broadcasted_iota(
                    jnp.int32, (chunk_rows, LANE), 0)
                m = rid < rows
                # jnp.where is a select, so garbage in unfetched rows is safe.
                accumulate(jnp.where(m, s, 0.0), jnp.where(m, t, 0.0))

    @pl.when(k == k_last)
    def _():
        out_ref[0] = acc_i[...]
        out_ref[1] = acc_s[...]
        out_ref[2] = acc_t[...]


def dice_loss(inputs, targets, smooth=1.0, tile_rows=8192, num_parallel=None):
    """Pallas implementation of DiceLoss.forward(inputs, targets, smooth).

    Inputs/targets may be any shape and any float dtype; pass bf16 operands
    straight through (the kernel casts on load) to halve HBM traffic.
    """
    x = inputs.reshape(-1)
    t = targets.reshape(-1)
    n = x.shape[0]
    smooth = float(smooth)

    full_rows = n // LANE

    # Tiny input (< 1024 elements): not worth a kernel launch.
    if full_rows < SUB:
        inter, s_sum, t_sum = _partial_sums_jax(x, t)
        return 1.0 - (2.0 * inter + smooth) / (s_sum + t_sum + smooth)

    # Ragged n: kernel handles the 128-aligned prefix; the <128-element tail
    # is summed here. No full-array jnp.pad copy; when n % 128 == 0 (common
    # for NCHW tensors) the (rows, 128) view is reshape-only.
    main = full_rows * LANE
    if main < n:
        tail_i, tail_s, tail_t = _partial_sums_jax(x[main:], t[main:])
        x, t = x[:main], t[:main]
    else:
        tail_i = tail_s = tail_t = jnp.float32(0.0)

    rows = full_rows
    x2 = x.reshape(rows, LANE)
    t2 = t.reshape(rows, LANE)

    # DMA tile: 8192 rows = 4 MiB/input/buffer (f32) -> 16 MiB double-buffered,
    # under the 32 MiB scoped default on all gens and inside v7x's 64 MiB
    # physical VMEM; compute walks it in CHUNK_ROWS sub-chunks.
    tile_rows = max(SUB, min(int(tile_rows), rows))
    if tile_rows >= CHUNK_ROWS:
        tile_rows -= tile_rows % CHUNK_ROWS
        chunk_rows = CHUNK_ROWS
    else:
        align = 16 if tile_rows >= 16 else SUB   # 16: bf16 sublane packing
        tile_rows -= tile_rows % align
        chunk_rows = tile_rows

    tiles_total = pl.cdiv(rows, tile_rows)

    if num_parallel is None:
        num_parallel = _detect_num_tensorcores()   # 1 on v5e/v6e, 2 on v7x
    num_parallel = max(1, min(int(num_parallel), tiles_total))

    # Only raise the scoped-VMEM limit when the estimate actually needs it
    # (cap leaves headroom under v7x's 64 MiB physical VMEM).
    vmem_est = (2 * tile_rows * LANE * (x2.dtype.itemsize + t2.dtype.itemsize)
                + 8 * chunk_rows * LANE * 4 + (1 << 20))
    vmem_limit = None
    if vmem_est > 26 * (1 << 20):
        vmem_limit = min(vmem_est + (2 << 20), 60 * (1 << 20))

    scratch = [pltpu.VMEM((SUB, LANE), jnp.float32)] * 3

    if num_parallel == 1:
        # Single TensorCore: clean 1-D reduction walk (no overshoot re-DMA,
        # no doubled init/writeback epilogue).
        ragged = (tiles_total * tile_rows != rows)
        kern = functools.partial(
            _dice_kernel, rows=rows, tile_rows=tile_rows,
            chunk_rows=chunk_rows, tiles_per=tiles_total,
            parallel=False, ragged=ragged)
        partials = pl.pallas_call(
            kern,
            out_shape=jax.ShapeDtypeStruct((3, SUB, LANE), jnp.float32),
            grid_spec=pltpu.PrefetchScalarGridSpec(
                num_scalar_prefetch=0,
                grid=(tiles_total,),
                in_specs=[pl.BlockSpec((tile_rows, LANE), lambda k: (k, 0)),
                          pl.BlockSpec((tile_rows, LANE), lambda k: (k, 0))],
                out_specs=pl.BlockSpec((3, SUB, LANE), lambda k: (0, 0, 0)),
                scratch_shapes=scratch),
            compiler_params=pltpu.CompilerParams(
                dimension_semantics=("arbitrary",),
                vmem_limit_bytes=vmem_limit),
        )(x2, t2)
        p = partials[None]
    else:
        tiles_per = pl.cdiv(tiles_total, num_parallel)
        ragged = (num_parallel * tiles_per * tile_rows != rows)

        def in_map(i, k):
            # Clamp so the DMA never targets a fully out-of-bounds block;
            # overshoot tiles contribute zero via the in-kernel row mask.
            return (jnp.minimum(i * tiles_per + k, tiles_total - 1), 0)

        kern = functools.partial(
            _dice_kernel, rows=rows, tile_rows=tile_rows,
            chunk_rows=chunk_rows, tiles_per=tiles_per,
            parallel=True, ragged=ragged)

        def run(dim0_sem, dim1_sem):
            return pl.pallas_call(
                kern,
                out_shape=jax.ShapeDtypeStruct((num_parallel * 3, SUB, LANE),
                                               jnp.float32),
                grid_spec=pltpu.PrefetchScalarGridSpec(
                    num_scalar_prefetch=0,
                    grid=(num_parallel, tiles_per),
                    in_specs=[pl.BlockSpec((tile_rows, LANE), in_map),
                              pl.BlockSpec((tile_rows, LANE), in_map)],
                    out_specs=pl.BlockSpec((3, SUB, LANE),
                                           lambda i, k: (i, 0, 0)),
                    scratch_shapes=scratch),
                compiler_params=pltpu.CompilerParams(
                    dimension_semantics=(dim0_sem, dim1_sem),
                    vmem_limit_bytes=vmem_limit),
            )(x2, t2)

        partials = None
        core_par = getattr(pltpu, "CORE_PARALLEL", None)
        arb = getattr(pltpu, "ARBITRARY", "arbitrary")
        if core_par is not None:
            try:
                # Guarantee the 2-TC split (v7x / megacore): up to 2x aggregate
                # HBM bandwidth for this purely streaming kernel. Correctness
                # does not depend on whether the split actually happens.
                partials = jax.block_until_ready(run(core_par, arb))
            except Exception:
                partials = None
        if partials is None:
            partials = run("parallel", "arbitrary")
        p = partials.reshape(num_parallel, 3, SUB, LANE)

    # Tiny epilogue: cross-lane reduce the partial slabs and apply dice.
    inter = jnp.sum(p[:, 0]) + tail_i
    s_sum = jnp.sum(p[:, 1]) + tail_s
    t_sum = jnp.sum(p[:, 2]) + tail_t
    dice = (2.0 * inter + smooth) / (s_sum + t_sum + smooth)
    return 1.0 - dice


def dice_loss_ref(inputs, targets, smooth=1.0):
    """Pure-JAX reference matching the PyTorch module."""
    s = jax.nn.sigmoid(inputs.reshape(-1).astype(jnp.float32))
    t = targets.reshape(-1).astype(jnp.float32)
    inter = jnp.sum(s * t)
    dice = (2.0 * inter + smooth) / (jnp.sum(s) + jnp.sum(t) + smooth)
    return 1.0 - dice


if __name__ == "__main__":
    key = jax.random.PRNGKey(0)
    k1, k2, k3, k4 = jax.random.split(key, 4)

    # NCHW logits + binary targets; n = 2048 (multiple of 128 -> zero-copy view).
    inputs = jax.random.normal(k1, (2, 4, 16, 16), dtype=jnp.float32)
    targets = (jax.random.uniform(k2, (2, 4, 16, 16)) > 0.5).astype(jnp.float32)
    loss = jax.block_until_ready(dice_loss(inputs, targets, smooth=1.0))
    ref = dice_loss_ref(inputs, targets, smooth=1.0)
    assert jnp.allclose(loss, ref, atol=2e-5, rtol=2e-5), (loss, ref)

    # Ragged size (n = 6555) in bf16: exercises the 128-aligned prefix +
    # wrapper-tail path, the in-kernel edge-tile mask, and cast-on-load.
    inputs2 = jax.random.normal(k3, (3, 5, 19, 23),
                                dtype=jnp.float32).astype(jnp.bfloat16)
    targets2 = (jax.random.uniform(k4, (3, 5, 19, 23)) > 0.5).astype(jnp.bfloat16)
    loss2 = jax.block_until_ready(dice_loss(inputs2, targets2, smooth=1.0))
    ref2 = dice_loss_ref(inputs2, targets2, smooth=1.0)
    assert jnp.allclose(loss2, ref2, atol=2e-5, rtol=2e-5), (loss2, ref2)

    print("KERNEL_OK")
</pallas_src>

<mosaic_0001>
module attributes {stable_mosaic.version = 11 : i64} {
  func.func @_dice_kernel(%arg0: i32, %arg1: memref<16x128xf32, #tpu.memory_space<vmem>>, %arg2: memref<16x128xf32, #tpu.memory_space<vmem>>, %arg3: memref<3x8x128xf32, #tpu.memory_space<vmem>>, %arg4: memref<8x128xf32, #tpu.memory_space<vmem>>, %arg5: memref<8x128xf32, #tpu.memory_space<vmem>>, %arg6: memref<8x128xf32, #tpu.memory_space<vmem>>) attributes {dimension_semantics = [#tpu.dimension_semantics<arbitrary>], iteration_bounds = array<i64: 1>, scalar_prefetch = 0 : i64, scratch_operands = 3 : i64, tpu.core_type = #tpu.core_type<tc>, window_params = [{transform_indices = @transform_0, window_bounds = array<i64: 16, 128>}, {transform_indices = @transform_1, window_bounds = array<i64: 16, 128>}, {pipeline_mode = #tpu.pipeline_mode<synchronous>, transform_indices = @transform_2, window_bounds = array<i64: 3, 8, 128>}]} {
    %c0_i32 = arith.constant 0 : i32
    %0 = arith.cmpi eq, %arg0, %c0_i32 : i32
    %1 = arith.extui %0 : i1 to i32
    %c0_i32_0 = arith.constant 0 : i32
    %2 = arith.cmpi ne, %1, %c0_i32_0 : i32
    scf.if %2 {
      %cst_24 = arith.constant 0.000000e+00 : f32
      %37 = vector.broadcast %cst_24 : f32 to vector<8x128xf32>
      %c0_25 = arith.constant 0 : index
      %c0_26 = arith.constant 0 : index
      %38 = vector.load %arg4[%c0_25, %c0_26] : memref<8x128xf32, #tpu.memory_space<vmem>>, vector<8x128xf32>
      tpu.vector_store %arg4[%c0_25, %c0_26], %37 {strides = array<i32>} : memref<8x128xf32, #tpu.memory_space<vmem>>, vector<8x128xf32>,
      %cst_27 = arith.constant 0.000000e+00 : f32
      %39 = vector.broadcast %cst_27 : f32 to vector<8x128xf32>
      %c0_28 = arith.constant 0 : index
      %c0_29 = arith.constant 0 : index
      %40 = vector.load %arg5[%c0_28, %c0_29] : memref<8x128xf32, #tpu.memory_space<vmem>>, vector<8x128xf32>
      tpu.vector_store %arg5[%c0_28, %c0_29], %39 {strides = array<i32>} : memref<8x128xf32, #tpu.memory_space<vmem>>, vector<8x128xf32>,
      %cst_30 = arith.constant 0.000000e+00 : f32
      %41 = vector.broadcast %cst_30 : f32 to vector<8x128xf32>
      %c0_31 = arith.constant 0 : index
      %c0_32 = arith.constant 0 : index
      %42 = vector.load %arg6[%c0_31, %c0_32] : memref<8x128xf32, #tpu.memory_space<vmem>>, vector<8x128xf32>
      tpu.vector_store %arg6[%c0_31, %c0_32], %41 {strides = array<i32>} : memref<8x128xf32, #tpu.memory_space<vmem>>, vector<8x128xf32>,
    } else {
    }
    %c0_i32_1 = arith.constant 0 : i32
    %c1_i32 = arith.constant 1 : i32
    %3 = arith.muli %c0_i32_1, %c1_i32 : i32
    %c0_i32_2 = arith.constant 0 : i32
    %4 = arith.addi %c0_i32_2, %3 : i32
    %c16_i32 = arith.constant 16 : i32
    %5 = arith.muli %4, %c16_i32 : i32
    %6 = tpu.assume_multiple %5, 16 : i32
    %7 = arith.index_cast %6 : i32 to index
    %c0 = arith.constant 0 : index
    %8 = vector.load %arg1[%7, %c0] : memref<16x128xf32, #tpu.memory_space<vmem>>, vector<16x128xf32>
    %9 = arith.index_cast %6 : i32 to index
    %c0_3 = arith.constant 0 : index
    %10 = vector.load %arg2[%9, %c0_3] : memref<16x128xf32, #tpu.memory_space<vmem>>, vector<16x128xf32>
    %cst = arith.constant 5.000000e-01 : f32
    %11 = vector.broadcast %cst : f32 to vector<16x128xf32>
    %12 = arith.mulf %11, %8 : vector<16x128xf32>
    %13 = math.tanh %12 : vector<16x128xf32>
    %cst_4 = arith.constant 5.000000e-01 : f32
    %14 = vector.broadcast %cst_4 : f32 to vector<16x128xf32>
    %15 = arith.mulf %14, %13 : vector<16x128xf32>
    %cst_5 = arith.constant 5.000000e-01 : f32
    %16 = vector.broadcast %cst_5 : f32 to vector<16x128xf32>
    %17 = arith.addf %15, %16 : vector<16x128xf32>
    %c0_6 = arith.constant 0 : index
    %c0_7 = arith.constant 0 : index
    %18 = vector.load %arg4[%c0_6, %c0_7] : memref<8x128xf32, #tpu.memory_space<vmem>>, vector<8x128xf32>
    %19 = arith.mulf %17, %10 : vector<16x128xf32>
    %20 = vector.shape_cast %19 : vector<16x128xf32> to vector<2x8x128xf32>
    %cst_8 = arith.constant dense<0.000000e+00> : vector<8x128xf32>
    %21 = vector.multi_reduction <add>, %20, %cst_8 [0] : vector<2x8x128xf32> to vector<8x128xf32>
    %22 = arith.addf %18, %21 : vector<8x128xf32>
    %c0_9 = arith.constant 0 : index
    %c0_10 = arith.constant 0 : index
    %23 = vector.load %arg4[%c0_9, %c0_10] : memref<8x128xf32, #tpu.memory_space<vmem>>, vector<8x128xf32>
    tpu.vector_store %arg4[%c0_9, %c0_10], %22 {strides = array<i32>} : memref<8x128xf32, #tpu.memory_space<vmem>>, vector<8x128xf32>,
    %c0_11 = arith.constant 0 : index
    %c0_12 = arith.constant 0 : index
    %24 = vector.load %arg5[%c0_11, %c0_12] : memref<8x128xf32, #tpu.memory_space<vmem>>, vector<8x128xf32>
    %25 = vector.shape_cast %17 : vector<16x128xf32> to vector<2x8x128xf32>
    %cst_13 = arith.constant dense<0.000000e+00> : vector<8x128xf32>
    %26 = vector.multi_reduction <add>, %25, %cst_13 [0] : vector<2x8x128xf32> to vector<8x128xf32>
    %27 = arith.addf %24, %26 : vector<8x128xf32>
    %c0_14 = arith.constant 0 : index
    %c0_15 = arith.constant 0 : index
    %28 = vector.load %arg5[%c0_14, %c0_15] : memref<8x128xf32, #tpu.memory_space<vmem>>, vector<8x128xf32>
    tpu.vector_store %arg5[%c0_14, %c0_15], %27 {strides = array<i32>} : memref<8x128xf32, #tpu.memory_space<vmem>>, vector<8x128xf32>,
    %c0_16 = arith.constant 0 : index
    %c0_17 = arith.constant 0 : index
    %29 = vector.load %arg6[%c0_16, %c0_17] : memref<8x128xf32, #tpu.memory_space<vmem>>, vector<8x128xf32>
    %30 = vector.shape_cast %10 : vector<16x128xf32> to vector<2x8x128xf32>
    %cst_18 = arith.constant dense<0.000000e+00> : vector<8x128xf32>
    %31 = vector.multi_reduction <add>, %30, %cst_18 [0] : vector<2x8x128xf32> to vector<8x128xf32>
    %32 = arith.addf %29, %31 : vector<8x128xf32>
    %c0_19 = arith.constant 0 : index
    %c0_20 = arith.constant 0 : index
    %33 = vector.load %arg6[%c0_19, %c0_20] : memref<8x128xf32, #tpu.memory_space<vmem>>, vector<8x128xf32>
    tpu.vector_store %arg6[%c0_19, %c0_20], %32 {strides = array<i32>} : memref<8x128xf32, #tpu.memory_space<vmem>>, vector<8x128xf32>,
    %c1_i32_21 = arith.constant 1 : i32
    %c0_i32_22 = arith.constant 0 : i32
    %34 = arith.cmpi eq, %arg0, %c0_i32_22 : i32
    %35 = arith.extui %34 : i1 to i32
    %c0_i32_23 = arith.constant 0 : i32
    %36 = arith.cmpi ne, %35, %c0_i32_23 : i32
    scf.if %36 {
      %c0_24 = arith.constant 0 : index
      %c0_25 = arith.constant 0 : index
      %37 = vector.load %arg4[%c0_24, %c0_25] : memref<8x128xf32, #tpu.memory_space<vmem>>, vector<8x128xf32>
      %c0_26 = arith.constant 0 : index
      %c0_27 = arith.constant 0 : index
      %c0_28 = arith.constant 0 : index
      %38 = vector.load %arg3[%c0_26, %c0_27, %c0_28] : memref<3x8x128xf32, #tpu.memory_space<vmem>>, vector<1x8x128xf32>
      %39 = vector.shape_cast %38 : vector<1x8x128xf32> to vector<8x128xf32>
      %40 = vector.shape_cast %37 : vector<8x128xf32> to vector<1x8x128xf32>
      tpu.vector_store %arg3[%c0_26, %c0_27, %c0_28], %40 {strides = array<i32>} : memref<3x8x128xf32, #tpu.memory_space<vmem>>, vector<1x8x128xf32>,
      %c0_29 = arith.constant 0 : index
      %c0_30 = arith.constant 0 : index
      %41 = vector.load %arg5[%c0_29, %c0_30] : memref<8x128xf32, #tpu.memory_space<vmem>>, vector<8x128xf32>
      %c1 = arith.constant 1 : index
      %c0_31 = arith.constant 0 : index
      %c0_32 = arith.constant 0 : index
      %42 = vector.load %arg3[%c1, %c0_31, %c0_32] : memref<3x8x128xf32, #tpu.memory_space<vmem>>, vector<1x8x128xf32>
      %43 = vector.shape_cast %42 : vector<1x8x128xf32> to vector<8x128xf32>
      %44 = vector.shape_cast %41 : vector<8x128xf32> to vector<1x8x128xf32>
      tpu.vector_store %arg3[%c1, %c0_31, %c0_32], %44 {strides = array<i32>} : memref<3x8x128xf32, #tpu.memory_space<vmem>>, vector<1x8x128xf32>,
      %c0_33 = arith.constant 0 : index
      %c0_34 = arith.constant 0 : index
      %45 = vector.load %arg6[%c0_33, %c0_34] : memref<8x128xf32, #tpu.memory_space<vmem>>, vector<8x128xf32>
      %c2 = arith.constant 2 : index
      %c0_35 = arith.constant 0 : index
      %c0_36 = arith.constant 0 : index
      %46 = vector.load %arg3[%c2, %c0_35, %c0_36] : memref<3x8x128xf32, #tpu.memory_space<vmem>>, vector<1x8x128xf32>
      %47 = vector.shape_cast %46 : vector<1x8x128xf32> to vector<8x128xf32>
      %48 = vector.shape_cast %45 : vector<8x128xf32> to vector<1x8x128xf32>
      tpu.vector_store %arg3[%c2, %c0_35, %c0_36], %48 {strides = array<i32>} : memref<3x8x128xf32, #tpu.memory_space<vmem>>, vector<1x8x128xf32>,
    } else {
    }
    return
  }
  func.func @transform_0(%arg0: i32) -> (i32, i32) {
    %c0_i32 = arith.constant 0 : i32
    %c0_i32_0 = arith.constant 0 : i32
    return %arg0, %c0_i32 : i32, i32
  }
  func.func @transform_1(%arg0: i32) -> (i32, i32) {
    %c0_i32 = arith.constant 0 : i32
    %c0_i32_0 = arith.constant 0 : i32
    return %arg0, %c0_i32 : i32, i32
  }
  func.func @transform_2(%arg0: i32) -> (i32, i32, i32) {
    %c0_i32 = arith.constant 0 : i32
    %c0_i32_0 = arith.constant 0 : i32
    %c0_i32_1 = arith.constant 0 : i32
    %c0_i32_2 = arith.constant 0 : i32
    return %c0_i32, %c0_i32_0, %c0_i32_1 : i32, i32, i32
  }
}

</mosaic_0001>

<bundles_post_ra>
// kernel: tpu_custom_call.1
= control target key start
LH: loop header
LB: loop body
LE: loop exit
PB: predicated region body
PF: predicated region fallthrough
CT: control target
= control target key end

     0   :  { %7 = vsyncpa [#allocation6], 0  ;;  %s248_s0 = inlined_call_operand.hbm [shape: f32[16,128], index: 0, kind: input, shape index: {}]   ;;  %s249_s1 = inlined_call_operand.hbm [shape: f32[16,128], index: 1, kind: input, shape index: {}]   ;;  %s250_s2 = inlined_call_operand.hbm [shape: f32[3,8,128], index: 2, kind: output, shape index: {}]  }
   0x1   :  { %8 = vsyncpa [#allocation9], 0 }
   0x2   :  { %9 = vsyncpa [#allocation7], 0  ;;  %s183_s9 = smov [#allocation5]   ;;  %s111_s13 = scalar_lea.hbm %s248_s0, 256 }
   0x3   :  { %s15_s10 = sshll.u32 %s183_s9, 4  ;;  %p112_p0 = scmp.ne.s32.totalorder %s248_s0, %s111_s13  ;;  %s16_s10 = int_to_ptr.vmem [resolvable:$true] %s15_s10 }
   0x4   :  { %p115_p1 = scmp.lt.u32.totalorder %s111_s13, %s248_s0 }
   0x6   :  { %p117_p2 = pnand %p115_p1, %p112_p0 }
   0x8   :  { %120 = shalt.err (!%p117_p2)
}
   0x9   :  { %s121_s18 = scalar_lea.vmem %s16_s10, 256  ;;  %p126_p4 = scmp.lt.s32.totalorder %s16_s10, %s16_s10 }
   0xa   :  { %p122_p3 = scmp.ne.s32.totalorder %s16_s10, %s121_s18  ;;  %p127_p5 = scmp.lt.s32.totalorder %s121_s18, %s121_s18 }
   0xc   :  { %p128_p6 = por %p127_p5, %p126_p4 }
   0xe   :  { %p129_p7 = pnand %p128_p6, %p122_p3 }
  0x10   :  { %132 = shalt.err (!%p129_p7)
}
  0x11   :  { %s184_s19 = smov 128   ;;  %s185_s20 = smov 8  }
  0x12   :  { %21 = dma.hbm_to_vmem [thread:$0]  %s248_s0, 256, %s16_s10, [#allocation6], %s184_s19, %s184_s19, %s185_s20  }
  0x13   :  { %s186_s23 = smov [#allocation8]   ;;  %s133_s27 = scalar_lea.hbm %s249_s1, 256 }
  0x14   :  { %s27_s24 = sshll.u32 %s186_s23, 4  ;;  %p134_p8 = scmp.ne.s32.totalorder %s249_s1, %s133_s27  ;;  %s28_s24 = int_to_ptr.vmem [resolvable:$true] %s27_s24 }
  0x15   :  { %p137_p9 = scmp.lt.u32.totalorder %s133_s27, %s249_s1 }
  0x17   :  { %p139_p10 = pnand %p137_p9, %p134_p8 }
  0x19   :  { %142 = shalt.err (!%p139_p10)
}
  0x1a   :  { %s143_s4 = scalar_lea.vmem %s28_s24, 256  ;;  %p148_p12 = scmp.lt.s32.totalorder %s28_s24, %s28_s24 }
  0x1b   :  { %p144_p11 = scmp.ne.s32.totalorder %s28_s24, %s143_s4  ;;  %p149_p13 = scmp.lt.s32.totalorder %s143_s4, %s143_s4 }
  0x1d   :  { %p150_p0 = por %p149_p13, %p148_p12 }
  0x1f   :  { %p151_p1 = pnand %p150_p0, %p144_p11 }
  0x21   :  { %154 = shalt.err (!%p151_p1)
}
  0x22   :  { %33 = dma.hbm_to_vmem [thread:$0]  %s249_s1, 256, %s28_s24, [#allocation9], %s184_s19, %s184_s19, %s185_s20  }
  0x23   :  { %177 = dma.done.wait [#allocation6], 256  }
  0x24   :  { %178 = vsyncadd [#allocation6], 4294967040 }
  0x25   :  { %179 = dma.done.wait [#allocation9], 256  }
  0x26   :  { %180 = vsyncadd [#allocation9], 4294967040  ;;  %v47_v0 = vld [vmem:[#allocation5] sm:$0xff]  ;;  %v48_v1 = vld [vmem:[#allocation5 + $0x8] sm:$0xff]  ;;  %s187_s1 = smov [#allocation10]  }
  0x27   :  { %v49_v2 = vld [vmem:[#allocation8] sm:$0xff]  ;;  %v50_v3 = vld [vmem:[#allocation8 + $0x8] sm:$0xff]  ;;  %v51_v4 = vmul.f32 0.5, %v47_v0  ;;  %v52_v5 = vmul.f32 0.5, %v48_v1  ;;  %s89_s6 = sshll.u32 %s187_s1, 4  ;;  %s90_s6 = int_to_ptr.vmem [resolvable:$true] %s89_s6 }
  0x28   :  { %v70_v6 = vadd.f32 %v50_v3, %v49_v2  ;;  %s155_s7 = scalar_lea.vmem %s90_s6, 384  ;;  %p160_p3 = scmp.lt.s32.totalorder %s90_s6, %s90_s6 }
  0x29   :  { %107 = vtanh.f32 %v51_v4  ;;  %p156_p2 = scmp.ne.s32.totalorder %s90_s6, %s155_s7  ;;  %p161_p4 = scmp.lt.s32.totalorder %s155_s7, %s155_s7 }
  0x2a   :  { %109 = vtanh.f32 %v52_v5  ;;  %83 = vst [vmem:[#allocation10 + $0x10] sm:$0xff] %v70_v6 }
  0x2b   :  { %p162_p5 = por %p161_p4, %p160_p3 }
  0x2d   :  { %p163_p6 = pnand %p162_p5, %p156_p2 }
  0x33   :  { %v108_v7 = vpop.eup %107 }
  0x34   :  { %v110_v8 = vpop.eup %109  ;;  %v55_v9 = vmul.f32 0.5, %v108_v7 }
  0x35   :  { %v56_v10 = vmul.f32 0.5, %v110_v8 }
  0x36   :  { %v57_v11 = vadd.f32 0.5, %v55_v9 }
  0x37   :  { %v58_v12 = vadd.f32 0.5, %v56_v10 }
  0x38   :  { %v60_v13 = vmul.f32 %v57_v11, %v49_v2 }
  0x39   :  { %v61_v14 = vmul.f32 %v58_v12, %v50_v3  ;;  %v66_v15 = vadd.f32 %v58_v12, %v57_v11 }
  0x3b   :  { %v62_v16 = vadd.f32 %v61_v14, %v60_v13  ;;  %80 = vst [vmem:[#allocation10 + $0x8] sm:$0xff] %v66_v15 }
  0x3d   :  { %77 = vst [vmem:[#allocation10] sm:$0xff] %v62_v16 }
  0x3e   :  { %166 = shalt.err (!%p163_p6)
}
  0x3f   :  { %s167_s10 = scalar_lea.hbm %s250_s2, 384 }
  0x40   :  { %p168_p7 = scmp.ne.s32.totalorder %s250_s2, %s167_s10  ;;  %p171_p8 = scmp.lt.u32.totalorder %s167_s10, %s250_s2 }
  0x42   :  { %p173_p9 = pnand %p171_p8, %p168_p7 }
  0x44   :  { %176 = shalt.err (!%p173_p9)
}
  0x45   :  { %95 = dma.vmem_to_hbm [thread:$0]  %s90_s6, 384, %s250_s2, [#allocation7], %s184_s19, %s184_s19, %s185_s20  }
  0x46   :  { %181 = dma.done.wait [#allocation7], 384  }
  0x47   :  { %182 = vsyncadd [#allocation7], 4294966912 }
  0x48   :  { %99 = vsyncpa [#allocation6], 1 }
  0x49   :  { %100 = vsyncpa [#allocation9], 1 }
  0x4a   :  { %101 = vsyncpa [#allocation7], 1 }

</bundles_post_ra>
